<compile_context>
chip_gen: v5e
topology: v5e:2x2
jax: 0.10.0
libtpu: 0.0.40
codegen_flags: <defaults>
</compile_context>

<pallas_src>
import math

import jax
import jax.numpy as jnp
from jax.experimental import pallas as pl
from jax.experimental.pallas import tpu as pltpu


def _round_up(x, m):
    return ((x + m - 1) // m) * m


# ---------------------------------------------------------------------------
# Kernels
# ---------------------------------------------------------------------------
def _fused_kernel(x_ref, w_ref, adj_ref, b_ref, o_ref):
    # Small-graph path: everything resident in VMEM, one launch, no HBM
    # round-trip for `support`.
    support = jnp.dot(x_ref[...], w_ref[...], preferred_element_type=jnp.float32)
    o_ref[...] = (
        jnp.dot(adj_ref[...], support, preferred_element_type=jnp.float32)
        + b_ref[...]
    ).astype(o_ref.dtype)


def _support_kernel(x_ref, w_ref, o_ref):
    # support_tile = x_tile @ weight   (MXU, f32 accumulation)
    o_ref[...] = jnp.dot(
        x_ref[...], w_ref[...], preferred_element_type=jnp.float32
    ).astype(o_ref.dtype)


def _aggregate_kernel(adj_ref, s_ref, b_ref, o_ref, acc_ref):
    # out_tile = sum_k adj[i, k] @ support[k] + bias, accumulated in f32 VMEM.
    k = pl.program_id(1)

    @pl.when(k == 0)
    def _():
        acc_ref[...] = jnp.zeros_like(acc_ref)

    acc_ref[...] += jnp.dot(
        adj_ref[...], s_ref[...], preferred_element_type=jnp.float32
    )

    @pl.when(k == pl.num_programs(1) - 1)
    def _():
        o_ref[...] = (acc_ref[...] + b_ref[...]).astype(o_ref.dtype)


# ---------------------------------------------------------------------------
# Wrapper
# ---------------------------------------------------------------------------
def graph_convolution(x, adj, weight, bias=None, *, fuse_vmem_budget=12 * 1024 * 1024):
    """GCN layer forward: adj @ (x @ weight) + bias.

    x: [N, F_in], adj: [N, N], weight: [F_in, F_out], bias: [F_out] or None.
    """
    n, f_in = x.shape
    f_out = weight.shape[1]
    out_dtype = x.dtype

    if bias is None:
        bias = jnp.zeros((f_out,), dtype=jnp.float32)

    # Feature dims padded to 128 (lane-dense, unmasked stores); zero fill keeps
    # the math exact.  These are O(N*F) / O(F^2), cheap compared with adj.
    f_in_p = _round_up(f_in, 128)
    f_out_p = _round_up(f_out, 128)
    wp = jnp.pad(weight.astype(jnp.float32),
                 ((0, f_in_p - f_in), (0, f_out_p - f_out)))
    bp = jnp.pad(bias.astype(jnp.float32), (0, f_out_p - f_out)).reshape(1, f_out_p)

    # ---------------- small-graph fused path --------------------------------
    n8 = _round_up(n, 8)
    fused_bytes = 4 * (n8 * n8 + n8 * f_in_p + f_in_p * f_out_p + 2 * n8 * f_out_p)
    if 2 * fused_bytes <= fuse_vmem_budget:
        n_p = n8
        xp = jnp.pad(x.astype(jnp.float32), ((0, n_p - n), (0, f_in_p - f_in)))
        adjp = adj.astype(jnp.float32)
        if n_p != n:
            adjp = jnp.pad(adjp, ((0, n_p - n), (0, n_p - n)))

        out_p = pl.pallas_call(
            _fused_kernel,
            out_shape=jax.ShapeDtypeStruct((n_p, f_out_p), out_dtype),
            grid_spec=pltpu.PrefetchScalarGridSpec(
                num_scalar_prefetch=0,
                grid=(1,),
                in_specs=[
                    pl.BlockSpec((n_p, f_in_p), lambda i: (0, 0)),
                    pl.BlockSpec((f_in_p, f_out_p), lambda i: (0, 0)),
                    pl.BlockSpec((n_p, n_p), lambda i: (0, 0)),
                    pl.BlockSpec((1, f_out_p), lambda i: (0, 0)),
                ],
                out_specs=pl.BlockSpec((n_p, f_out_p), lambda i: (0, 0)),
            ),
            compiler_params=pltpu.CompilerParams(
                dimension_semantics=("arbitrary",),
            ),
            cost_estimate=pl.CostEstimate(
                flops=2 * n_p * f_in_p * f_out_p + 2 * n_p * n_p * f_out_p,
                transcendentals=0,
                bytes_accessed=fused_bytes,
            ),
        )(xp, wp, adjp, bp)
        return out_p[:n, :f_out]

    # ---------------- large-graph tiled path ---------------------------------
    tile = 512
    n_p = _round_up(n, tile)
    tm_agg = 512                                         # MXU LHS rows >= 256
    tk = 1024 if n_p % 1024 == 0 else 512                # bigger adj DMAs when aligned
    tm_sup = next(c for c in (2048, 1024, 512) if n_p % c == 0)  # decoupled row tile

    xp = jnp.pad(x.astype(jnp.float32), ((0, n_p - n), (0, f_in_p - f_in)))
    adjp = adj.astype(jnp.float32)
    if n_p != n:
        # TODO(synk): for large non-tile-aligned N this is one extra HBM pass
        # over the O(N^2) adjacency; in-kernel masking of the ragged edge (or
        # bf16-at-rest adj upstream) would remove it.
        adjp = jnp.pad(adjp, ((0, n_p - n), (0, n_p - n)))

    # kernel 1: support = x @ weight  (row-tiled, weight resident)
    support = pl.pallas_call(
        _support_kernel,
        out_shape=jax.ShapeDtypeStruct((n_p, f_out_p), jnp.float32),
        grid_spec=pltpu.PrefetchScalarGridSpec(
            num_scalar_prefetch=0,
            grid=(n_p // tm_sup,),
            in_specs=[
                pl.BlockSpec((tm_sup, f_in_p), lambda i: (i, 0)),
                pl.BlockSpec((f_in_p, f_out_p), lambda i: (0, 0)),
            ],
            out_specs=pl.BlockSpec((tm_sup, f_out_p), lambda i: (i, 0)),
        ),
        compiler_params=pltpu.CompilerParams(
            dimension_semantics=("parallel",),
        ),
        cost_estimate=pl.CostEstimate(
            flops=2 * n_p * f_in_p * f_out_p,
            transcendentals=0,
            bytes_accessed=4 * (n_p * f_in_p + f_in_p * f_out_p + n_p * f_out_p),
        ),
    )(xp, wp)

    # kernel 2: out = adj @ support + bias  (row tiles x K tiles, f32 scratch acc)
    # TODO(synk): F_out is not tiled (acc/support blocks are (_, F_out_p));
    # add an output-column grid axis for very wide layers (F_out >> 1024).
    n_row_tiles = n_p // tm_agg
    n_k_tiles = n_p // tk
    out_p = pl.pallas_call(
        _aggregate_kernel,
        out_shape=jax.ShapeDtypeStruct((n_p, f_out_p), out_dtype),
        grid_spec=pltpu.PrefetchScalarGridSpec(
            num_scalar_prefetch=0,
            grid=(n_row_tiles, n_k_tiles),
            in_specs=[
                pl.BlockSpec((tm_agg, tk), lambda i, k: (i, k)),
                pl.BlockSpec((tk, f_out_p), lambda i, k: (k, 0)),
                pl.BlockSpec((1, f_out_p), lambda i, k: (0, 0)),
            ],
            out_specs=pl.BlockSpec((tm_agg, f_out_p), lambda i, k: (i, 0)),
            scratch_shapes=[pltpu.VMEM((tm_agg, f_out_p), jnp.float32)],
        ),
        compiler_params=pltpu.CompilerParams(
            dimension_semantics=("parallel", "arbitrary"),
        ),
        cost_estimate=pl.CostEstimate(
            flops=2 * n_p * n_p * f_out_p,
            transcendentals=0,
            bytes_accessed=4 * (n_p * n_p
                                + n_row_tiles * n_p * f_out_p
                                + n_p * f_out_p),
        ),
    )(adjp, support, bp)

    return out_p[:n, :f_out]


# ---------------------------------------------------------------------------
# Test
# ---------------------------------------------------------------------------
def _make_problem(key, n, f_in, f_out):
    k_x, k_adj, k_w, k_b = jax.random.split(key, 4)
    x = jax.random.normal(k_x, (n, f_in), dtype=jnp.float32)
    adj_raw = (jax.random.uniform(k_adj, (n, n)) > 0.5).astype(jnp.float32)
    adj = adj_raw + adj_raw.T + jnp.eye(n, dtype=jnp.float32)
    adj = adj / jnp.sum(adj, axis=1, keepdims=True)
    # Parameter init mirroring reset_parameters(): uniform(-stdv, stdv)
    stdv = 1.0 / math.sqrt(f_out)
    weight = jax.random.uniform(k_w, (f_in, f_out), minval=-stdv, maxval=stdv,
                                dtype=jnp.float32)
    bias = jax.random.uniform(k_b, (f_out,), minval=-stdv, maxval=stdv,
                              dtype=jnp.float32)
    return x, adj, weight, bias


if __name__ == "__main__":
    key = jax.random.PRNGKey(0)
    k_small, k_big = jax.random.split(key, 2)

    # 1) Small problem (exercises the fused single-call path), mirrors the
    #    original module at N=16, 32 -> 32 features.
    x, adj, weight, bias = _make_problem(k_small, 16, 32, 32)
    out = jax.block_until_ready(graph_convolution(x, adj, weight, bias))
    ref = adj @ (x @ weight) + bias
    assert out.shape == (16, 32)
    assert jnp.allclose(out, ref, atol=1e-2, rtol=1e-2), (
        float(jnp.max(jnp.abs(out - ref)))
    )

    # 2) Larger problem (exercises the tiled, K-accumulating path:
    #    3 row tiles x 3 K tiles at N=1536).
    x2, adj2, weight2, bias2 = _make_problem(k_big, 1536, 96, 64)
    out2 = jax.block_until_ready(graph_convolution(x2, adj2, weight2, bias2))
    ref2 = adj2 @ (x2 @ weight2) + bias2
    assert out2.shape == (1536, 64)
    assert jnp.allclose(out2, ref2, atol=1e-2, rtol=1e-2), (
        float(jnp.max(jnp.abs(out2 - ref2)))
    )

    print("KERNEL_OK")
</pallas_src>

<mosaic_0001>
module attributes {stable_mosaic.version = 11 : i64} {
  func.func @_fused_kernel(%arg0: i32, %arg1: memref<16x128xf32, #tpu.memory_space<vmem>>, %arg2: memref<128x128xf32, #tpu.memory_space<vmem>>, %arg3: memref<16x16xf32, #tpu.memory_space<vmem>>, %arg4: memref<1x128xf32, #tpu.memory_space<vmem>>, %arg5: memref<16x128xf32, #tpu.memory_space<vmem>>) attributes {dimension_semantics = [#tpu.dimension_semantics<arbitrary>], iteration_bounds = array<i64: 1>, scalar_prefetch = 0 : i64, scratch_operands = 0 : i64, tpu.core_type = #tpu.core_type<tc>, window_params = [{pipeline_mode = #tpu.pipeline_mode<synchronous>, transform_indices = @transform_0, window_bounds = array<i64: 16, 128>}, {pipeline_mode = #tpu.pipeline_mode<synchronous>, transform_indices = @transform_1, window_bounds = array<i64: 128, 128>}, {pipeline_mode = #tpu.pipeline_mode<synchronous>, transform_indices = @transform_2, window_bounds = array<i64: 16, 16>}, {pipeline_mode = #tpu.pipeline_mode<synchronous>, transform_indices = @transform_3, window_bounds = array<i64: 1, 128>}, {pipeline_mode = #tpu.pipeline_mode<synchronous>, transform_indices = @transform_4, window_bounds = array<i64: 16, 128>}]} {
    %c0 = arith.constant 0 : index
    %c0_0 = arith.constant 0 : index
    %0 = vector.load %arg1[%c0, %c0_0] : memref<16x128xf32, #tpu.memory_space<vmem>>, vector<16x128xf32>
    %c0_1 = arith.constant 0 : index
    %c0_2 = arith.constant 0 : index
    %1 = vector.load %arg2[%c0_1, %c0_2] : memref<128x128xf32, #tpu.memory_space<vmem>>, vector<128x128xf32>
    %cst = arith.constant dense<0.000000e+00> : vector<16x128xf32>
    %2 = tpu.matmul %0, %1, %cst {dimension_numbers = #tpu.dot_dimension_numbers<[1], [0], [0], [1], [0, 0, 1, 1], [], []>} : vector<16x128xf32>, vector<128x128xf32>, vector<16x128xf32> -> vector<16x128xf32>
    %c0_3 = arith.constant 0 : index
    %c0_4 = arith.constant 0 : index
    %3 = vector.load %arg3[%c0_3, %c0_4] : memref<16x16xf32, #tpu.memory_space<vmem>>, vector<16x16xf32>
    %cst_5 = arith.constant dense<0.000000e+00> : vector<16x128xf32>
    %4 = tpu.matmul %3, %2, %cst_5 {dimension_numbers = #tpu.dot_dimension_numbers<[1], [0], [0], [1], [0, 0, 1, 1], [], []>} : vector<16x16xf32>, vector<16x128xf32>, vector<16x128xf32> -> vector<16x128xf32>
    %c0_6 = arith.constant 0 : index
    %c0_7 = arith.constant 0 : index
    %5 = vector.load %arg4[%c0_6, %c0_7] : memref<1x128xf32, #tpu.memory_space<vmem>>, vector<1x128xf32>
    %6 = vector.broadcast %5 : vector<1x128xf32> to vector<16x128xf32>
    %7 = arith.addf %4, %6 : vector<16x128xf32>
    %c0_8 = arith.constant 0 : index
    %c0_9 = arith.constant 0 : index
    %8 = vector.load %arg5[%c0_8, %c0_9] : memref<16x128xf32, #tpu.memory_space<vmem>>, vector<16x128xf32>
    tpu.vector_store %arg5[%c0_8, %c0_9], %7 {strides = array<i32>} : memref<16x128xf32, #tpu.memory_space<vmem>>, vector<16x128xf32>,
    return
  }
  func.func @transform_0(%arg0: i32) -> (i32, i32) {
    %c0_i32 = arith.constant 0 : i32
    %c0_i32_0 = arith.constant 0 : i32
    %c0_i32_1 = arith.constant 0 : i32
    return %c0_i32, %c0_i32_0 : i32, i32
  }
  func.func @transform_1(%arg0: i32) -> (i32, i32) {
    %c0_i32 = arith.constant 0 : i32
    %c0_i32_0 = arith.constant 0 : i32
    %c0_i32_1 = arith.constant 0 : i32
    return %c0_i32, %c0_i32_0 : i32, i32
  }
  func.func @transform_2(%arg0: i32) -> (i32, i32) {
    %c0_i32 = arith.constant 0 : i32
    %c0_i32_0 = arith.constant 0 : i32
    %c0_i32_1 = arith.constant 0 : i32
    return %c0_i32, %c0_i32_0 : i32, i32
  }
  func.func @transform_3(%arg0: i32) -> (i32, i32) {
    %c0_i32 = arith.constant 0 : i32
    %c0_i32_0 = arith.constant 0 : i32
    %c0_i32_1 = arith.constant 0 : i32
    return %c0_i32, %c0_i32_0 : i32, i32
  }
  func.func @transform_4(%arg0: i32) -> (i32, i32) {
    %c0_i32 = arith.constant 0 : i32
    %c0_i32_0 = arith.constant 0 : i32
    %c0_i32_1 = arith.constant 0 : i32
    return %c0_i32, %c0_i32_0 : i32, i32
  }
}

</mosaic_0001>

<bundles_post_ra>
// kernel: tpu_custom_call.1
= control target key start
LH: loop header
LB: loop body
LE: loop exit
PB: predicated region body
PF: predicated region fallthrough
CT: control target
= control target key end

     0   :  { %9 = vsyncpa [#allocation3], 0  ;;  %s349_s0 = inlined_call_operand.hbm [shape: f32[16,128], index: 0, kind: input, shape index: {}]   ;;  %s350_s1 = inlined_call_operand.hbm [shape: f32[128,128], index: 1, kind: input, shape index: {}]   ;;  %s351_s2 = inlined_call_operand.hbm [shape: f32[16,16], index: 2, kind: input, shape index: {}]   ;;  %s352_s3 = inlined_call_operand.vmem [shape: f32[1,128], index: 3, kind: input, shape index: {}]   ;;  %s353_s4 = inlined_call_operand.hbm [shape: f32[16,128], index: 4, kind: output, shape index: {}]  }
   0x1   :  { %10 = vsyncpa [#allocation6], 0 }
   0x2   :  { %11 = vsyncpa [#allocation4], 0  ;;  %s29_s17 = sshll.u32 %s350_s1, 4  ;;  %s291_s18 = smov [#allocation5]   ;;  %s30_s17 = int_to_ptr.hbm [resolvable:$true] %s29_s17 }
   0x3   :  { %s31_s19 = sshll.u32 %s291_s18, 4  ;;  %s16_s22 = sshll.u32 %s349_s0, 4  ;;  %s32_s19 = int_to_ptr.vmem [resolvable:$true] %s31_s19  ;;  %s17_s22 = int_to_ptr.hbm [resolvable:$true] %s16_s22 }
   0x4   :  { %s292_s23 = smov 128   ;;  %s293_s24 = smov 8  }
   0x5   :  { %37 = dma.hbm_to_vmem [thread:$0]  %s30_s17, 2048, %s32_s19, [#allocation6], %s292_s23, %s292_s23, %s293_s24  }
   0x6   :  { %s294_s25 = smov [#allocation2]   ;;  %s42_s1 = sshll.u32 %s351_s2, 4  ;;  %s43_s1 = int_to_ptr.hbm [resolvable:$true] %s42_s1 }
   0x7   :  { %s18_s26 = sshll.u32 %s294_s25, 4  ;;  %s295_s0 = smov [#allocation7]   ;;  %s19_s26 = int_to_ptr.vmem [resolvable:$true] %s18_s26 }
   0x8   :  { %24 = dma.hbm_to_vmem [thread:$0]  %s17_s22, 256, %s19_s26, [#allocation3], %s292_s23, %s292_s23, %s293_s24  }
   0x9   :  { %s44_s29 = sshll.u32 %s295_s0, 4  ;;  %s45_s29 = int_to_ptr.vmem [resolvable:$true] %s44_s29 }
   0xa   :  { %50 = dma.hbm_to_vmem [thread:$0]  %s43_s1, 256, %s45_s29, [#allocation6], %s292_s23, %s292_s23, %s293_s24  }
   0xb   :  { %285 = dma.done.wait [#allocation3], 256  }
   0xc   :  { %286 = vsyncadd [#allocation3], 4294967040 }
   0xd   :  { %287 = dma.done.wait [#allocation6], 2304  }
   0xe   :  { %288 = vsyncadd [#allocation6], 4294964992  ;;  %v82_v0 = vld [vmem:[#allocation5 + $0x78] sm:$0xff]  ;;  %v81_v1 = vld [vmem:[#allocation5 + $0x70] sm:$0xff]  ;;  %vm112_vm0 = vcmask 130048   ;;  %s296_s5 = smov [#allocation8]  }
   0xf   :  { %166 = vmatpush.msra.mxu2 %v82_v0  ;;  %83 = vmatpush.msra.mxu0 %v82_v0  ;;  %v80_v2 = vld [vmem:[#allocation5 + $0x68] sm:$0xff]  ;;  %v79_v3 = vld [vmem:[#allocation5 + $0x60] sm:$0xff]  ;;  %v78_v4 = vld [vmem:[#allocation5 + $0x58] sm:$0xff]  ;;  %s148_s6 = sshll.u32 %s296_s5, 4  ;;  %s150_s9 = sshll.u32 %s353_s4, 4  ;;  %s149_s6 = int_to_ptr.vmem [resolvable:$true] %s148_s6  ;;  %s151_s9 = int_to_ptr.hbm [resolvable:$true] %s150_s9 }
  0x10   :  { %v77_v5 = vld [vmem:[#allocation5 + $0x50] sm:$0xff]  ;;  %v76_v6 = vld [vmem:[#allocation5 + $0x48] sm:$0xff]  ;;  %v75_v7 = vld [vmem:[#allocation5 + $0x40] sm:$0xff] }
  0x11   :  { %167 = vmatpush.msra.mxu2 %v81_v1  ;;  %84 = vmatpush.msra.mxu0 %v81_v1  ;;  %v74_v8 = vld [vmem:[#allocation5 + $0x38] sm:$0xff]  ;;  %v73_v9 = vld [vmem:[#allocation5 + $0x30] sm:$0xff]  ;;  %v72_v10 = vld [vmem:[#allocation5 + $0x28] sm:$0xff] }
  0x12   :  { %v71_v11 = vld [vmem:[#allocation5 + $0x20] sm:$0xff]  ;;  %v70_v12 = vld [vmem:[#allocation5 + $0x18] sm:$0xff]  ;;  %v69_v13 = vld [vmem:[#allocation5 + $0x10] sm:$0xff] }
  0x13   :  { %168 = vmatpush.msra.mxu2 %v80_v2  ;;  %85 = vmatpush.msra.mxu0 %v80_v2  ;;  %v68_v14 = vld [vmem:[#allocation5 + $0x8] sm:$0xff]  ;;  %v67_v15 = vld [vmem:[#allocation5] sm:$0xff]  ;;  %v66_v16 = vld [vmem:[#allocation2 + $0x8] sm:$0xff] }
  0x14   :  { %v65_v17 = vld [vmem:[#allocation2] sm:$0xff]  ;;  %v106_v20 = vld [vmem:[#allocation7] sm:$0xff]  ;;  %v107_v21 = vld [vmem:[#allocation7 + $0x8] sm:$0xff] }
  0x15   :  { %169 = vmatpush.msra.mxu2 %v79_v3  ;;  %86 = vmatpush.msra.mxu0 %v79_v3  ;;  %v188_v22 = vld [vmem:[%s352_s3] ss:$0 sm:$0xff] }
  0x17   :  { %170 = vmatpush.msra.mxu2 %v78_v4  ;;  %87 = vmatpush.msra.mxu0 %v78_v4 }
  0x19   :  { %171 = vmatpush.msra.mxu2 %v77_v5  ;;  %88 = vmatpush.msra.mxu0 %v77_v5 }
  0x1b   :  { %172 = vmatpush.msra.mxu2 %v76_v6  ;;  %89 = vmatpush.msra.mxu0 %v76_v6 }
  0x1d   :  { %173 = vmatpush.msra.mxu2 %v75_v7  ;;  %90 = vmatpush.msra.mxu0 %v75_v7 }
  0x1f   :  { %174 = vmatpush.msra.mxu2 %v74_v8  ;;  %91 = vmatpush.msra.mxu0 %v74_v8 }
  0x21   :  { %175 = vmatpush.msra.mxu2 %v73_v9  ;;  %92 = vmatpush.msra.mxu0 %v73_v9 }
  0x23   :  { %176 = vmatpush.msra.mxu2 %v72_v10  ;;  %93 = vmatpush.msra.mxu0 %v72_v10 }
  0x25   :  { %177 = vmatpush.msra.mxu2 %v71_v11  ;;  %94 = vmatpush.msra.mxu0 %v71_v11 }
  0x27   :  { %178 = vmatpush.msra.mxu2 %v70_v12  ;;  %95 = vmatpush.msra.mxu0 %v70_v12 }
  0x29   :  { %179 = vmatpush.msra.mxu2 %v69_v13  ;;  %96 = vmatpush.msra.mxu0 %v69_v13 }
  0x2b   :  { %180 = vmatpush.msra.mxu2 %v68_v14  ;;  %97 = vmatpush.msra.mxu0 %v68_v14 }
  0x2d   :  { %181 = vmatpush.msra.mxu2 %v67_v15  ;;  %98 = vmatpush.msra.mxu0 %v67_v15 }
  0x2e   :  { %102 = vmatmul.f32.vlgmr.msra.gmra.mxu2 %v66_v16  ;;  %99 = vmatmul.f32.vlgmr.msra.gmra.mxu0 %v65_v17 }
  0xab   :  { %v100_v19 = vpop.f32.mrf.mxu0 }
  0xb1   :  { %v103_v18 = vpop.f32.mrf.mxu2 }
  0xb2   :  { %133 = vmatpush.msra.mxu1 %v103_v18 }
  0xb4   :  { %134 = vmatpush.msra.mxu1 %v100_v19 }
  0xb5   :  { %164 = vmatmul.msk.f32.vlgmr.msra.gmra.mxu1 %vm112_vm0, %v106_v20 }
  0xbd   :  { %165 = vmatmul.msk.f32.gmra.mxu1 %vm112_vm0, %v107_v21 }
 0x132   :  { %v136_v23 = vpop.f32.mrf.mxu1 }
 0x133   :  { %v137_v24 = vadd.f32 %v188_v22, %v136_v23 }
 0x135   :  { %142 = vst [vmem:[#allocation8] sm:$0xff] %v137_v24 }
 0x13a   :  { %v139_v25 = vpop.f32.mrf.mxu1 }
 0x13b   :  { %v140_v26 = vadd.f32 %v188_v22, %v139_v25 }
 0x13d   :  { %143 = vst [vmem:[#allocation8 + $0x8] sm:$0xff] %v140_v26 }
 0x13e   :  { %156 = dma.vmem_to_hbm [thread:$0]  %s149_s6, 256, %s151_s9, [#allocation4], %s292_s23, %s292_s23, %s293_s24  }
 0x13f   :  { %289 = dma.done.wait [#allocation4], 256  }
 0x140   :  { %290 = vsyncadd [#allocation4], 4294967040 }
 0x141   :  { %161 = vsyncpa [#allocation3], 1 }
 0x142   :  { %162 = vsyncpa [#allocation6], 1 }
 0x143   :  { %163 = vsyncpa [#allocation4], 1 }

</bundles_post_ra>
